<compile_context>
chip_gen: v6e
topology: v6e:2x2x1
jax: 0.10.0
libtpu: 0.0.40
codegen_flags: <defaults>
</compile_context>

<pallas_src>
import jax
import jax.numpy as jnp
from jax.experimental import pallas as pl
from jax.experimental.pallas import tpu as pltpu

KH = KW = 5          # kernel_size=5
PAD = 2              # padding=2 ("same" conv)
BN_EPS = 1e-5        # nn.BatchNorm2d default eps
CTX_DIM = 10         # nn.Linear(10, 16) input features
C = 16               # channel count implied by Linear(10, 16) + expand_as


def conv_synthesizer_kernel(x_ref, w_ref, aux_ref, ctx_ref, out_ref):
    """Fused conv5x5 -> BN(train) -> +ctx.  Shapes:
       x_ref (B,H,W*C)  w_ref (KH*W*C + W*C, W*C)  aux_ref (13, W*C)  ctx_ref (B,10)."""
    B, H, WC = x_ref.shape
    W = WC // C
    KHWC = KH * WC

    x = x_ref[...]                                              # (B, H, W*C) lane-dense

    # --- 5x5 conv as ONE matmul: H-halo via 5 small sublane shifts (zero fill),
    # --- W-halo baked into the Toeplitz-expanded weight (zero rows).
    taps = []
    for kh in range(KH):
        dh = kh - PAD
        if dh == 0:
            s = x
        elif dh > 0:
            s = jnp.concatenate(
                [x[:, dh:, :], jnp.zeros((B, dh, WC), jnp.float32)], axis=1)
        else:
            s = jnp.concatenate(
                [jnp.zeros((B, -dh, WC), jnp.float32), x[:, :H + dh, :]], axis=1)
        taps.append(s.reshape(B * H, WC))
    patches = jnp.concatenate(taps, axis=1)                     # (B*H, KH*W*C)
    acc = jnp.dot(patches, w_ref[0:KHWC, :],
                  preferred_element_type=jnp.float32)           # (B*H, W*C) lane-dense
    # NOTE: the Conv2d bias is intentionally omitted here -- a per-channel
    # constant cancels exactly through training-mode BatchNorm over (N, H, W).

    # --- BatchNorm2d batch stats, fully lane-dense: sublane-reduce, then one
    # --- tiny matmul with the channel group-sum matrix (rows KHWC:KHWC+WC of
    # --- the weight slab) yields per-channel sums already broadcast across W.
    n = float(B * H * W)
    s12 = jnp.concatenate(
        [jnp.sum(acc, axis=0, keepdims=True),
         jnp.sum(acc * acc, axis=0, keepdims=True)], axis=0)    # (2, W*C)
    stats = jnp.dot(s12, w_ref[KHWC:KHWC + WC, :],
                    preferred_element_type=jnp.float32)         # (2, W*C), tiled
    mean = stats[0:1, :] * (1.0 / n)                            # (1, W*C)
    var = stats[1:2, :] * (1.0 / n) - mean * mean               # biased batch var
    inv = jax.lax.rsqrt(var + BN_EPS)                           # EUP
    gamma = aux_ref[CTX_DIM + 1:CTX_DIM + 2, :]                 # pre-tiled (1, W*C)
    beta = aux_ref[CTX_DIM + 2:CTX_DIM + 3, :]
    scale = gamma * inv                                         # (1, W*C)

    # --- context Linear(10 -> C): projected straight into the tiled lane layout
    # --- (wctx is pre-tiled in the aux slab) and folded into the BN shift, so
    # --- no separate full-tensor broadcast add is needed.
    ctx_proj = jnp.dot(ctx_ref[...], aux_ref[0:CTX_DIM, :],
                       preferred_element_type=jnp.float32)      # (B, W*C)
    shift = beta - mean * scale + ctx_proj + aux_ref[CTX_DIM:CTX_DIM + 1, :]

    # --- single fused multiply-add epilogue + lane-dense (unmasked) store.
    y = acc.reshape(B, H, WC) * scale[None, :, :] + shift[:, None, :]
    out_ref[...] = y.astype(out_ref.dtype)


def prepare_params(wconv, gamma, beta, wctx, bctx, *, width):
    """One-time parameter packing (outside the per-step hot path).

    Returns:
      weight_slab (KH*W*Cin + W*Cout, W*Cout): width-Toeplitz conv weight
        stacked with the BN channel group-sum matrix.
      aux_slab (CTX_DIM+3, W*Cout): [wctx; bctx; gamma; beta], each tiled to the
        lane-dense (w*C + c) layout.
    """
    kh_, kw_, cin, cout = wconv.shape
    W = width
    WC = W * cout

    # Toeplitz expansion over the width axis; out-of-range taps are zeroed,
    # which implements the W-direction "same" padding for free.
    kw = jnp.arange(W)[:, None] - jnp.arange(W)[None, :] + PAD       # (W_in, W_out)
    valid = (kw >= 0) & (kw < KW)
    toep = wconv[:, jnp.clip(kw, 0, KW - 1), :, :]                   # (KH, Wi, Wo, Ci, Co)
    toep = toep * valid[None, :, :, None, None].astype(wconv.dtype)
    toep = jnp.transpose(toep, (0, 1, 3, 2, 4))                      # (KH, Wi, Ci, Wo, Co)
    w_toep = toep.reshape(kh_ * W * cin, WC).astype(jnp.float32)

    # Channel group-sum matrix: (s @ G)[j] = sum_w s[w*C + (j % C)], i.e. a
    # per-channel reduction that lands already broadcast in the tiled layout.
    lane = jnp.arange(WC)
    g = (lane[:, None] % cout == lane[None, :] % cout).astype(jnp.float32)
    weight_slab = jnp.concatenate([w_toep, g], axis=0)

    tile = lambda v: jnp.tile(v.reshape(-1, cout).astype(jnp.float32), (1, W))
    aux_slab = jnp.concatenate(
        [tile(wctx), tile(bctx), tile(gamma), tile(beta)], axis=0)   # (13, W*C)
    return weight_slab, aux_slab


@jax.jit
def conv_synthesizer_forward_nhwc(x_nhwc, context, weight_slab, aux_slab):
    """Primary entry point: x_nhwc (B,H,W,C) f32, context (B,10) f32 -> (B,H,W,C)."""
    B, H, W, Cc = x_nhwc.shape
    WC = W * Cc
    x = x_nhwc.reshape(B, H, WC)                 # free: layout plumbing only
    out = pl.pallas_call(
        conv_synthesizer_kernel,
        out_shape=jax.ShapeDtypeStruct((B, H, WC), jnp.float32),
        grid=(1,),
        in_specs=[
            pl.BlockSpec((B, H, WC), lambda i: (0, 0, 0)),
            pl.BlockSpec(weight_slab.shape, lambda i: (0, 0)),
            pl.BlockSpec(aux_slab.shape, lambda i: (0, 0)),
            pl.BlockSpec(context.shape, lambda i: (0, 0)),
        ],
        out_specs=pl.BlockSpec((B, H, WC), lambda i: (0, 0, 0)),
        compiler_params=pltpu.CompilerParams(dimension_semantics=("arbitrary",)),
    )(x, weight_slab, aux_slab, context)
    # TODO(synk): at real 512-channel / large-spatial sizes, tile H over a
    # "parallel" grid axis (2-row halo, partial sum/sumsq + normalize pass) to
    # use both v7x TensorCores, re-derive tiles for its 64 MiB VMEM, and cast
    # the matmul operands to bf16 while keeping stats/epilogue in f32.
    return out.reshape(B, H, W, Cc)              # free


@jax.jit
def conv_synthesizer_forward(trigger_nchw, context, weight_slab, aux_slab):
    """NCHW compatibility wrapper (PyTorch layout). Prefer the NHWC entry point
    inside an NHWC model so no transposes surround the kernel."""
    x = jnp.transpose(trigger_nchw, (0, 2, 3, 1))
    y = conv_synthesizer_forward_nhwc(x, context, weight_slab, aux_slab)
    return jnp.transpose(y, (0, 3, 1, 2))


def reference_forward(trigger_nchw, context, params):
    """Pure-JAX reference with the module's exact semantics (incl. conv bias)."""
    wconv, bconv, gamma, beta, wctx, bctx = params
    B = trigger_nchw.shape[0]
    w_oihw = jnp.transpose(wconv, (3, 2, 0, 1))                       # (Cout,Cin,kh,kw)
    x = jax.lax.conv_general_dilated(
        trigger_nchw, w_oihw, window_strides=(1, 1),
        padding=((PAD, PAD), (PAD, PAD)),
        dimension_numbers=("NCHW", "OIHW", "NCHW"))
    x = x + bconv.reshape(1, -1, 1, 1)       # bias kept here; it cancels through BN
    mean = jnp.mean(x, axis=(0, 2, 3), keepdims=True)
    var = jnp.mean((x - mean) ** 2, axis=(0, 2, 3), keepdims=True)
    x = (x - mean) * jax.lax.rsqrt(var + BN_EPS)
    x = x * gamma.reshape(1, -1, 1, 1) + beta.reshape(1, -1, 1, 1)
    ctx_proj = context @ wctx + bctx                                   # (B, Cout)
    return x + ctx_proj.reshape(B, -1, 1, 1)


if __name__ == "__main__":
    # Small shapes consistent with the module: batch=2, channels=16 (fixed by
    # the Linear(10,16) + expand_as), spatial 8x8 -> W*C = 128 lane-dense.
    B, H, W = 2, 8, 8

    key = jax.random.PRNGKey(0)
    (k_wconv, k_bconv, k_gamma, k_beta,
     k_wctx, k_bctx, k_trig, k_ctx) = jax.random.split(key, 8)

    # NOTE: the module zero-inits the conv weight (nn.init.constant); we draw a
    # nonzero weight here so the test actually exercises the conv/Toeplitz path.
    conv_bound = 1.0 / float((C * KH * KW) ** 0.5)
    wconv = jax.random.uniform(k_wconv, (KH, KW, C, C), jnp.float32,
                               -conv_bound, conv_bound)
    bconv = jax.random.uniform(k_bconv, (C,), jnp.float32, -conv_bound, conv_bound)
    # Non-default BN affine params so the fused scale/shift path is exercised.
    gamma = 1.0 + 0.1 * jax.random.normal(k_gamma, (C,), jnp.float32)
    beta = 0.1 * jax.random.normal(k_beta, (C,), jnp.float32)
    lin_bound = 1.0 / float(CTX_DIM ** 0.5)
    wctx = jax.random.uniform(k_wctx, (CTX_DIM, C), jnp.float32, -lin_bound, lin_bound)
    bctx = jax.random.uniform(k_bctx, (C,), jnp.float32, -lin_bound, lin_bound)

    trigger = jax.random.normal(k_trig, (B, C, H, W), jnp.float32)
    context = jax.random.normal(k_ctx, (B, CTX_DIM), jnp.float32)

    weight_slab, aux_slab = prepare_params(wconv, gamma, beta, wctx, bctx, width=W)

    out = conv_synthesizer_forward(trigger, context, weight_slab, aux_slab)
    out = jax.block_until_ready(out)

    ref = jax.block_until_ready(
        reference_forward(trigger, context, (wconv, bconv, gamma, beta, wctx, bctx)))
    assert out.shape == (B, C, H, W), out.shape
    assert bool(jnp.all(jnp.isfinite(out)))
    assert bool(jnp.allclose(out, ref, atol=1e-4, rtol=1e-4)), "mismatch vs reference"

    print("KERNEL_OK")
</pallas_src>

<mosaic_0001>
module attributes {stable_mosaic.version = 11 : i64} {
  func.func @conv_synthesizer_kernel(%arg0: i32, %arg1: memref<2x8x128xf32, #tpu.memory_space<vmem>>, %arg2: memref<768x128xf32, #tpu.memory_space<vmem>>, %arg3: memref<13x128xf32, #tpu.memory_space<vmem>>, %arg4: memref<2x10xf32, #tpu.memory_space<vmem>>, %arg5: memref<2x8x128xf32, #tpu.memory_space<vmem>>) attributes {dimension_semantics = [#tpu.dimension_semantics<arbitrary>], iteration_bounds = array<i64: 1>, scalar_prefetch = 0 : i64, scratch_operands = 0 : i64, tpu.core_type = #tpu.core_type<tc>, window_params = [{pipeline_mode = #tpu.pipeline_mode<synchronous>, transform_indices = @transform_0, window_bounds = array<i64: 2, 8, 128>}, {pipeline_mode = #tpu.pipeline_mode<synchronous>, transform_indices = @transform_1, window_bounds = array<i64: 768, 128>}, {pipeline_mode = #tpu.pipeline_mode<synchronous>, transform_indices = @transform_2, window_bounds = array<i64: 13, 128>}, {pipeline_mode = #tpu.pipeline_mode<synchronous>, transform_indices = @transform_3, window_bounds = array<i64: 2, 10>}, {pipeline_mode = #tpu.pipeline_mode<synchronous>, transform_indices = @transform_4, window_bounds = array<i64: 2, 8, 128>}]} {
    %c0 = arith.constant 0 : index
    %c0_0 = arith.constant 0 : index
    %c0_1 = arith.constant 0 : index
    %0 = vector.load %arg1[%c0, %c0_0, %c0_1] : memref<2x8x128xf32, #tpu.memory_space<vmem>>, vector<2x8x128xf32>
    %cst = arith.constant 0.000000e+00 : f32
    %1 = vector.broadcast %cst : f32 to vector<2x2x128xf32>
    %2 = vector.extract_strided_slice %0 {offsets = [0, 0, 0], sizes = [2, 6, 128], strides = [1, 1, 1]} : vector<2x8x128xf32> to vector<2x6x128xf32>
    %3 = tpu.concatenate %1, %2 in 1 : vector<2x2x128xf32>, vector<2x6x128xf32> -> vector<2x8x128xf32>
    %4 = vector.shape_cast %3 : vector<2x8x128xf32> to vector<16x128xf32>
    %cst_2 = arith.constant 0.000000e+00 : f32
    %5 = vector.broadcast %cst_2 : f32 to vector<2x1x128xf32>
    %6 = vector.extract_strided_slice %0 {offsets = [0, 0, 0], sizes = [2, 7, 128], strides = [1, 1, 1]} : vector<2x8x128xf32> to vector<2x7x128xf32>
    %7 = tpu.concatenate %5, %6 in 1 : vector<2x1x128xf32>, vector<2x7x128xf32> -> vector<2x8x128xf32>
    %8 = vector.shape_cast %7 : vector<2x8x128xf32> to vector<16x128xf32>
    %9 = vector.shape_cast %0 : vector<2x8x128xf32> to vector<16x128xf32>
    %10 = vector.extract_strided_slice %0 {offsets = [0, 1, 0], sizes = [2, 7, 128], strides = [1, 1, 1]} : vector<2x8x128xf32> to vector<2x7x128xf32>
    %cst_3 = arith.constant 0.000000e+00 : f32
    %11 = vector.broadcast %cst_3 : f32 to vector<2x1x128xf32>
    %12 = tpu.concatenate %10, %11 in 1 : vector<2x7x128xf32>, vector<2x1x128xf32> -> vector<2x8x128xf32>
    %13 = vector.shape_cast %12 : vector<2x8x128xf32> to vector<16x128xf32>
    %14 = vector.extract_strided_slice %0 {offsets = [0, 2, 0], sizes = [2, 6, 128], strides = [1, 1, 1]} : vector<2x8x128xf32> to vector<2x6x128xf32>
    %cst_4 = arith.constant 0.000000e+00 : f32
    %15 = vector.broadcast %cst_4 : f32 to vector<2x2x128xf32>
    %16 = tpu.concatenate %14, %15 in 1 : vector<2x6x128xf32>, vector<2x2x128xf32> -> vector<2x8x128xf32>
    %17 = vector.shape_cast %16 : vector<2x8x128xf32> to vector<16x128xf32>
    %18 = tpu.concatenate %4, %8, %9, %13, %17 in 1 : vector<16x128xf32>, vector<16x128xf32>, vector<16x128xf32>, vector<16x128xf32>, vector<16x128xf32> -> vector<16x640xf32>
    %c0_5 = arith.constant 0 : index
    %c0_6 = arith.constant 0 : index
    %19 = vector.load %arg2[%c0_5, %c0_6] : memref<768x128xf32, #tpu.memory_space<vmem>>, vector<640x128xf32>
    %cst_7 = arith.constant dense<0.000000e+00> : vector<16x128xf32>
    %20 = tpu.matmul %18, %19, %cst_7 {dimension_numbers = #tpu.dot_dimension_numbers<[1], [0], [0], [1], [0, 0, 1, 1], [], []>} : vector<16x640xf32>, vector<640x128xf32>, vector<16x128xf32> -> vector<16x128xf32>
    %cst_8 = arith.constant dense<0.000000e+00> : vector<128xf32>
    %21 = vector.multi_reduction <add>, %20, %cst_8 [0] : vector<16x128xf32> to vector<128xf32>
    %22 = vector.shape_cast %21 : vector<128xf32> to vector<1x128xf32>
    %23 = arith.mulf %20, %20 : vector<16x128xf32>
    %cst_9 = arith.constant dense<0.000000e+00> : vector<128xf32>
    %24 = vector.multi_reduction <add>, %23, %cst_9 [0] : vector<16x128xf32> to vector<128xf32>
    %25 = vector.shape_cast %24 : vector<128xf32> to vector<1x128xf32>
    %26 = tpu.concatenate %22, %25 in 0 : vector<1x128xf32>, vector<1x128xf32> -> vector<2x128xf32>
    %c640 = arith.constant 640 : index
    %c0_10 = arith.constant 0 : index
    %27 = vector.load %arg2[%c640, %c0_10] : memref<768x128xf32, #tpu.memory_space<vmem>>, vector<128x128xf32>
    %cst_11 = arith.constant dense<0.000000e+00> : vector<2x128xf32>
    %28 = tpu.matmul %26, %27, %cst_11 {dimension_numbers = #tpu.dot_dimension_numbers<[1], [0], [0], [1], [0, 0, 1, 1], [], []>} : vector<2x128xf32>, vector<128x128xf32>, vector<2x128xf32> -> vector<2x128xf32>
    %29 = vector.extract_strided_slice %28 {offsets = [0, 0], sizes = [1, 128], strides = [1, 1]} : vector<2x128xf32> to vector<1x128xf32>
    %cst_12 = arith.constant 7.812500e-03 : f32
    %30 = vector.broadcast %cst_12 : f32 to vector<1x128xf32>
    %31 = arith.mulf %29, %30 : vector<1x128xf32>
    %32 = vector.extract_strided_slice %28 {offsets = [1, 0], sizes = [1, 128], strides = [1, 1]} : vector<2x128xf32> to vector<1x128xf32>
    %cst_13 = arith.constant 7.812500e-03 : f32
    %33 = vector.broadcast %cst_13 : f32 to vector<1x128xf32>
    %34 = arith.mulf %32, %33 : vector<1x128xf32>
    %35 = arith.mulf %31, %31 : vector<1x128xf32>
    %36 = arith.subf %34, %35 : vector<1x128xf32>
    %cst_14 = arith.constant 9.99999974E-6 : f32
    %37 = vector.broadcast %cst_14 : f32 to vector<1x128xf32>
    %38 = arith.addf %36, %37 : vector<1x128xf32>
    %39 = math.rsqrt %38 : vector<1x128xf32>
    %c11 = arith.constant 11 : index
    %c0_15 = arith.constant 0 : index
    %40 = vector.load %arg3[%c11, %c0_15] : memref<13x128xf32, #tpu.memory_space<vmem>>, vector<1x128xf32>
    %c12 = arith.constant 12 : index
    %c0_16 = arith.constant 0 : index
    %41 = vector.load %arg3[%c12, %c0_16] : memref<13x128xf32, #tpu.memory_space<vmem>>, vector<1x128xf32>
    %42 = arith.mulf %40, %39 : vector<1x128xf32>
    %c0_17 = arith.constant 0 : index
    %c0_18 = arith.constant 0 : index
    %43 = vector.load %arg4[%c0_17, %c0_18] : memref<2x10xf32, #tpu.memory_space<vmem>>, vector<2x10xf32>
    %c0_19 = arith.constant 0 : index
    %c0_20 = arith.constant 0 : index
    %44 = vector.load %arg3[%c0_19, %c0_20] : memref<13x128xf32, #tpu.memory_space<vmem>>, vector<10x128xf32>
    %cst_21 = arith.constant dense<0.000000e+00> : vector<2x128xf32>
    %45 = tpu.matmul %43, %44, %cst_21 {dimension_numbers = #tpu.dot_dimension_numbers<[1], [0], [0], [1], [0, 0, 1, 1], [], []>} : vector<2x10xf32>, vector<10x128xf32>, vector<2x128xf32> -> vector<2x128xf32>
    %46 = arith.mulf %31, %42 : vector<1x128xf32>
    %47 = arith.subf %41, %46 : vector<1x128xf32>
    %48 = vector.broadcast %47 : vector<1x128xf32> to vector<2x128xf32>
    %49 = arith.addf %48, %45 : vector<2x128xf32>
    %c10 = arith.constant 10 : index
    %c0_22 = arith.constant 0 : index
    %50 = vector.load %arg3[%c10, %c0_22] : memref<13x128xf32, #tpu.memory_space<vmem>>, vector<1x128xf32>
    %51 = vector.broadcast %50 : vector<1x128xf32> to vector<2x128xf32>
    %52 = arith.addf %49, %51 : vector<2x128xf32>
    %53 = vector.shape_cast %20 : vector<16x128xf32> to vector<2x8x128xf32>
    %54 = vector.shape_cast %42 : vector<1x128xf32> to vector<1x1x128xf32>
    %55 = vector.broadcast %54 : vector<1x1x128xf32> to vector<2x8x128xf32>
    %56 = arith.mulf %53, %55 : vector<2x8x128xf32>
    %57 = vector.shape_cast %52 : vector<2x128xf32> to vector<2x1x128xf32>
    %58 = vector.broadcast %57 : vector<2x1x128xf32> to vector<2x8x128xf32>
    %59 = arith.addf %56, %58 : vector<2x8x128xf32>
    %c0_23 = arith.constant 0 : index
    %c0_24 = arith.constant 0 : index
    %c0_25 = arith.constant 0 : index
    %60 = vector.load %arg5[%c0_23, %c0_24, %c0_25] : memref<2x8x128xf32, #tpu.memory_space<vmem>>, vector<2x8x128xf32>
    tpu.vector_store %arg5[%c0_23, %c0_24, %c0_25], %59 {strides = array<i32>} : memref<2x8x128xf32, #tpu.memory_space<vmem>>, vector<2x8x128xf32>,
    return
  }
  func.func @transform_0(%arg0: i32) -> (i32, i32, i32) {
    %c0_i32 = arith.constant 0 : i32
    %c0_i32_0 = arith.constant 0 : i32
    %c0_i32_1 = arith.constant 0 : i32
    %c0_i32_2 = arith.constant 0 : i32
    return %c0_i32, %c0_i32_0, %c0_i32_1 : i32, i32, i32
  }
  func.func @transform_1(%arg0: i32) -> (i32, i32) {
    %c0_i32 = arith.constant 0 : i32
    %c0_i32_0 = arith.constant 0 : i32
    %c0_i32_1 = arith.constant 0 : i32
    return %c0_i32, %c0_i32_0 : i32, i32
  }
  func.func @transform_2(%arg0: i32) -> (i32, i32) {
    %c0_i32 = arith.constant 0 : i32
    %c0_i32_0 = arith.constant 0 : i32
    %c0_i32_1 = arith.constant 0 : i32
    return %c0_i32, %c0_i32_0 : i32, i32
  }
  func.func @transform_3(%arg0: i32) -> (i32, i32) {
    %c0_i32 = arith.constant 0 : i32
    %c0_i32_0 = arith.constant 0 : i32
    %c0_i32_1 = arith.constant 0 : i32
    return %c0_i32, %c0_i32_0 : i32, i32
  }
  func.func @transform_4(%arg0: i32) -> (i32, i32, i32) {
    %c0_i32 = arith.constant 0 : i32
    %c0_i32_0 = arith.constant 0 : i32
    %c0_i32_1 = arith.constant 0 : i32
    %c0_i32_2 = arith.constant 0 : i32
    return %c0_i32, %c0_i32_0, %c0_i32_1 : i32, i32, i32
  }
}

</mosaic_0001>

<bundles_post_ra>
// kernel: conv_synthesizer_forward_nhwc.1
= control target key start
LH: loop header
LB: loop body
LE: loop exit
PB: predicated region body
PF: predicated region fallthrough
CT: control target
= control target key end

     0   :  { %9 = vsyncpa [#allocation3], 0  ;;  %s862_s15 = smov [#allocation2]   ;;  %s957_s0 = inlined_call_operand.vmem [shape: f32[2,8,128], index: 0, kind: input, shape index: {}]   ;;  %s958_s1 = inlined_call_operand.hbm [shape: f32[768,128], index: 1, kind: input, shape index: {}]   ;;  %s959_s2 = inlined_call_operand.vmem [shape: f32[13,128], index: 2, kind: input, shape index: {}]   ;;  %s960_s3 = inlined_call_operand.vmem [shape: f32[2,10], index: 3, kind: input, shape index: {}]   ;;  %s961_s4 = inlined_call_operand.vmem [shape: f32[2,8,128], index: 4, kind: output, shape index: {}]  }
   0x1   :  { %s17_s16 = sshll.u32 %s862_s15, 4  ;;  %s18_s16 = int_to_ptr.vmem [resolvable:$true] %s17_s16 }
   0x2   :  { %s848_s17 = scalar_lea.vmem %s18_s16, 12288  ;;  %p853_p1 = scmp.lt.s32.totalorder %s18_s16, %s18_s16 }
   0x3   :  { %p849_p0 = scmp.ne.s32.totalorder %s18_s16, %s848_s17  ;;  %p854_p2 = scmp.lt.s32.totalorder %s848_s17, %s848_s17 }
   0x5   :  { %p855_p3 = por %p854_p2, %p853_p1 }
   0x7   :  { %p856_p4 = pnand %p855_p3, %p849_p0 }
   0x9   :  { %859 = shalt.err (!%p856_p4)
}
   0xa   :  { %s863_s18 = smov 128   ;;  %s864_s19 = smov 8  }
   0xb   :  { %23 = dma.hbm_to_vmem [thread:$0]  %s958_s1, 12288, %s18_s16, [#allocation3], %s863_s18, %s863_s18, %s864_s19  }
   0xc   :  { %860 = dma.done.wait [#allocation3], 12288  }
   0xd   :  { %861 = vsyncadd [#allocation3], 4294955008  ;;  %v94_v0 = vld [vmem:[#allocation2 + $0xf8] sm:$0xff]  ;;  %v93_v4 = vld [vmem:[#allocation2 + $0xf0] sm:$0xff]  ;;  %vm46_vm0 = vcmask 1040384   ;;  %vm39_vm1 = vcmask 1041408  }
   0xe   :  { %v126_v1 = vld [vmem:[#allocation2 + $0x1f8] sm:$0xff]  ;;  %641 = vmatprep.subr.mxu0 %v94_v0  ;;  %v125_v5 = vld [vmem:[#allocation2 + $0x1f0] sm:$0xff]  ;;  %v92_v8 = vld [vmem:[#allocation2 + $0xe8] sm:$0xff]  ;;  %vm53_vm3 = vcmask 1046528   ;;  %vm60_vm5 = vcmask 1045504   ;;  %vm866_vm6 = vmmov 0  }
   0xf   :  { %v78_v2 = vld [vmem:[#allocation2 + $0x78] sm:$0xff]  ;;  %679 = vmatprep.subr.mxu1 %v126_v1  ;;  %v77_v6 = vld [vmem:[#allocation2 + $0x70] sm:$0xff]  ;;  %v124_v9 = vld [vmem:[#allocation2 + $0x1e8] sm:$0xff]  ;;  %vm488_vm7 = vcmask 80896  }
  0x10   :  { %v110_v3 = vld [vmem:[#allocation2 + $0x178] sm:$0xff]  ;;  %642 = vmatpush3.msra.mxu0 %v78_v2  ;;  %v109_v7 = vld [vmem:[#allocation2 + $0x170] sm:$0xff]  ;;  %v76_v10 = vld [vmem:[#allocation2 + $0x68] sm:$0xff] }
  0x11   :  { %680 = vmatpush3.msra.mxu1 %v110_v3  ;;  %643 = vmatprep.subr.mxu0 %v93_v4  ;;  %v108_v11 = vld [vmem:[#allocation2 + $0x168] sm:$0xff]  ;;  %v91_v12 = vld [vmem:[#allocation2 + $0xe0] sm:$0xff]  ;;  %v90_v16 = vld [vmem:[#allocation2 + $0xd8] sm:$0xff] }
  0x12   :  { %681 = vmatprep.subr.mxu1 %v125_v5  ;;  %644 = vmatpush3.msra.mxu0 %v77_v6  ;;  %v123_v13 = vld [vmem:[#allocation2 + $0x1e0] sm:$0xff]  ;;  %v122_v17 = vld [vmem:[#allocation2 + $0x1d8] sm:$0xff]  ;;  %v89_v20 = vld [vmem:[#allocation2 + $0xd0] sm:$0xff] }
  0x13   :  { %682 = vmatpush3.msra.mxu1 %v109_v7  ;;  %645 = vmatprep.subr.mxu0 %v92_v8  ;;  %v75_v14 = vld [vmem:[#allocation2 + $0x60] sm:$0xff]  ;;  %v74_v18 = vld [vmem:[#allocation2 + $0x58] sm:$0xff]  ;;  %v121_v21 = vld [vmem:[#allocation2 + $0x1d0] sm:$0xff] }
  0x14   :  { %683 = vmatprep.subr.mxu1 %v124_v9  ;;  %v107_v15 = vld [vmem:[#allocation2 + $0x160] sm:$0xff]  ;;  %646 = vmatpush3.msra.mxu0 %v76_v10  ;;  %v106_v19 = vld [vmem:[#allocation2 + $0x158] sm:$0xff]  ;;  %v73_v22 = vld [vmem:[#allocation2 + $0x50] sm:$0xff] }
  0x15   :  { %684 = vmatpush3.msra.mxu1 %v108_v11  ;;  %647 = vmatprep.subr.mxu0 %v91_v12  ;;  %v105_v23 = vld [vmem:[#allocation2 + $0x150] sm:$0xff]  ;;  %v88_v24 = vld [vmem:[#allocation2 + $0xc8] sm:$0xff]  ;;  %v87_v28 = vld [vmem:[#allocation2 + $0xc0] sm:$0xff] }
  0x16   :  { %685 = vmatprep.subr.mxu1 %v123_v13  ;;  %648 = vmatpush3.msra.mxu0 %v75_v14  ;;  %v120_v25 = vld [vmem:[#allocation2 + $0x1c8] sm:$0xff]  ;;  %v119_v29 = vld [vmem:[#allocation2 + $0x1c0] sm:$0xff]  ;;  %v86_v32 = vld [vmem:[#allocation2 + $0xb8] sm:$0xff] }
  0x17   :  { %686 = vmatpush3.msra.mxu1 %v107_v15  ;;  %649 = vmatprep.subr.mxu0 %v90_v16  ;;  %v72_v26 = vld [vmem:[#allocation2 + $0x48] sm:$0xff]  ;;  %v71_v30 = vld [vmem:[#allocation2 + $0x40] sm:$0xff]  ;;  %v118_v33 = vld [vmem:[#allocation2 + $0x1b8] sm:$0xff] }
  0x18   :  { %687 = vmatprep.subr.mxu1 %v122_v17  ;;  %650 = vmatpush3.msra.mxu0 %v74_v18  ;;  %v104_v27 = vld [vmem:[#allocation2 + $0x148] sm:$0xff]  ;;  %v103_v31 = vld [vmem:[#allocation2 + $0x140] sm:$0xff]  ;;  %v70_v34 = vld [vmem:[#allocation2 + $0x38] sm:$0xff] }
  0x19   :  { %688 = vmatpush3.msra.mxu1 %v106_v19  ;;  %651 = vmatprep.subr.mxu0 %v89_v20  ;;  %v102_v35 = vld [vmem:[#allocation2 + $0x138] sm:$0xff]  ;;  %v85_v36 = vld [vmem:[#allocation2 + $0xb0] sm:$0xff]  ;;  %v84_v40 = vld [vmem:[#allocation2 + $0xa8] sm:$0xff] }
  0x1a   :  { %689 = vmatprep.subr.mxu1 %v121_v21  ;;  %652 = vmatpush3.msra.mxu0 %v73_v22  ;;  %v117_v37 = vld [vmem:[#allocation2 + $0x1b0] sm:$0xff]  ;;  %v116_v41 = vld [vmem:[#allocation2 + $0x1a8] sm:$0xff]  ;;  %v83_v44 = vld [vmem:[#allocation2 + $0xa0] sm:$0xff] }
  0x1b   :  { %690 = vmatpush3.msra.mxu1 %v105_v23  ;;  %653 = vmatprep.subr.mxu0 %v88_v24  ;;  %v69_v38 = vld [vmem:[#allocation2 + $0x30] sm:$0xff]  ;;  %v68_v42 = vld [vmem:[#allocation2 + $0x28] sm:$0xff]  ;;  %v115_v45 = vld [vmem:[#allocation2 + $0x1a0] sm:$0xff] }
  0x1c   :  { %691 = vmatprep.subr.mxu1 %v120_v25  ;;  %654 = vmatpush3.msra.mxu0 %v72_v26  ;;  %v101_v39 = vld [vmem:[#allocation2 + $0x130] sm:$0xff]  ;;  %v100_v43 = vld [vmem:[#allocation2 + $0x128] sm:$0xff]  ;;  %v67_v46 = vld [vmem:[#allocation2 + $0x20] sm:$0xff] }
  0x1d   :  { %692 = vmatpush3.msra.mxu1 %v104_v27  ;;  %655 = vmatprep.subr.mxu0 %v87_v28  ;;  %v99_v47 = vld [vmem:[#allocation2 + $0x120] sm:$0xff]  ;;  %v82_v48 = vld [vmem:[#allocation2 + $0x98] sm:$0xff]  ;;  %v81_v52 = vld [vmem:[#allocation2 + $0x90] sm:$0xff] }
  0x1e   :  { %693 = vmatprep.subr.mxu1 %v119_v29  ;;  %656 = vmatpush3.msra.mxu0 %v71_v30  ;;  %v114_v49 = vld [vmem:[#allocation2 + $0x198] sm:$0xff]  ;;  %v113_v53 = vld [vmem:[#allocation2 + $0x190] sm:$0xff]  ;;  %v31_v56 = vld [vmem:[%s957_s0] sm:$0xff]  ;;  %v865_v29 = vmov 0.0  }
  0x1f   :  { %694 = vmatpush3.msra.mxu1 %v103_v31  ;;  %657 = vmatprep.subr.mxu0 %v86_v32  ;;  %v66_v50 = vld [vmem:[#allocation2 + $0x18] sm:$0xff]  ;;  %v65_v54 = vld [vmem:[#allocation2 + $0x10] sm:$0xff]  ;;  %v80_v57 = vld [vmem:[#allocation2 + $0x88] sm:$0xff]  ;;  %v42_v63 = vrot.slane %v31_v56, 7  ;;  %v49_v3 = vrot.slane %v31_v56, 1  ;;  %v35_v5 = vrot.slane %v31_v56, 6 }
  0x20   :  { %695 = vmatprep.subr.mxu1 %v118_v33  ;;  %658 = vmatpush3.msra.mxu0 %v70_v34  ;;  %v98_v51 = vld [vmem:[#allocation2 + $0x118] sm:$0xff]  ;;  %v97_v55 = vld [vmem:[#allocation2 + $0x110] sm:$0xff]  ;;  %v112_v58 = vld [vmem:[#allocation2 + $0x188] sm:$0xff]  ;;  %v56_v13 = vrot.slane %v31_v56, 2 }
  0x21   :  { %696 = vmatpush3.msra.mxu1 %v102_v35  ;;  %659 = vmatprep.subr.mxu0 %v85_v36  ;;  %v64_v59 = vld [vmem:[#allocation2 + $0x8] sm:$0xff]  ;;  %v79_v61 = vld [vmem:[#allocation2 + $0x80] sm:$0xff]  ;;  %vm905_vm2 = vmneg %vm46_vm0 }
  0x22   :  { %697 = vmatprep.subr.mxu1 %v117_v37  ;;  %660 = vmatpush3.msra.mxu0 %v69_v38  ;;  %v96_v60 = vld [vmem:[#allocation2 + $0x108] sm:$0xff]  ;;  %v111_v62 = vld [vmem:[#allocation2 + $0x180] sm:$0xff]  ;;  %vm910_vm4 = vmneg %vm39_vm1 }
  0x23   :  { %698 = vmatpush3.msra.mxu1 %v101_v39  ;;  %661 = vmatprep.subr.mxu0 %v84_v40  ;;  %v902_v0 = vld [vmem:[%s957_s0 + $0x8] sm:$0xff]  ;;  %v63_v1 = vld [vmem:[#allocation2] sm:$0xff]  ;;  %v142_v8 = vld [vmem:[#allocation2 + $0x278] sm:$0xff] }
  0x24   :  { %699 = vmatprep.subr.mxu1 %v116_v41  ;;  %662 = vmatpush3.msra.mxu0 %v68_v42  ;;  %v95_v4 = vld [vmem:[#allocation2 + $0x100] sm:$0xff]  ;;  %v43_v7 = vrot.slane %v902_v0, 7  ;;  %v50_v9 = vrot.slane %v902_v0, 1  ;;  %v141_v10 = vld [vmem:[#allocation2 + $0x270] sm:$0xff]  ;;  %v36_v11 = vrot.slane %v902_v0, 6  ;;  %v140_v12 = vld [vmem:[#allocation2 + $0x268] sm:$0xff] }
  0x25   :  { %700 = vmatpush3.msra.mxu1 %v100_v43  ;;  %663 = vmatprep.subr.mxu0 %v83_v44  ;;  %v139_v14 = vld [vmem:[#allocation2 + $0x260] sm:$0xff]  ;;  %v138_v15 = vld [vmem:[#allocation2 + $0x258] sm:$0xff]  ;;  %v137_v16 = vld [vmem:[#allocation2 + $0x250] sm:$0xff]  ;;  %v57_v27 = vrot.slane %v902_v0, 2 }
  0x26   :  { %701 = vmatprep.subr.mxu1 %v115_v45  ;;  %664 = vmatpush3.msra.mxu0 %v67_v46  ;;  %v136_v17 = vld [vmem:[#allocation2 + $0x248] sm:$0xff]  ;;  %v135_v18 = vld [vmem:[#allocation2 + $0x240] sm:$0xff]  ;;  %v134_v19 = vld [vmem:[#allocation2 + $0x238] sm:$0xff] }
  0x27   :  { %702 = vmatpush3.msra.mxu1 %v99_v47  ;;  %665 = vmatprep.subr.mxu0 %v82_v48  ;;  %v133_v20 = vld [vmem:[#allocation2 + $0x230] sm:$0xff]  ;;  %v132_v21 = vld [vmem:[#allocation2 + $0x228] sm:$0xff]  ;;  %v131_v22 = vld [vmem:[#allocation2 + $0x220] sm:$0xff] }
  0x28   :  { %703 = vmatprep.subr.mxu1 %v114_v49  ;;  %666 = vmatpush3.msra.mxu0 %v66_v50  ;;  %v130_v23 = vld [vmem:[#allocation2 + $0x218] sm:$0xff]  ;;  %v129_v24 = vld [vmem:[#allocation2 + $0x210] sm:$0xff]  ;;  %v128_v25 = vld [vmem:[#allocation2 + $0x208] sm:$0xff] }
  0x29   :  { %704 = vmatpush3.msra.mxu1 %v98_v51  ;;  %667 = vmatprep.subr.mxu0 %v81_v52  ;;  %v127_v26 = vld [vmem:[#allocation2 + $0x200] sm:$0xff]  ;;  %v400_v28 = vld [vmem:[#allocation2 + $0x2f8] sm:$0xff]  ;;  %v399_v30 = vld [vmem:[#allocation2 + $0x2f0] sm:$0xff] }
  0x2a   :  { %705 = vmatprep.subr.mxu1 %v113_v53  ;;  %668 = vmatpush3.msra.mxu0 %v65_v54  ;;  %v398_v31 = vld [vmem:[#allocation2 + $0x2e8] sm:$0xff]  ;;  %v397_v32 = vld [vmem:[#allocation2 + $0x2e0] sm:$0xff]  ;;  %v396_v33 = vld [vmem:[#allocation2 + $0x2d8] sm:$0xff] }
  0x2b   :  { %706 = vmatpush3.msra.mxu1 %v97_v55  ;;  %669 = vmatprep.subr.mxu0 %v80_v57  ;;  %v395_v34 = vld [vmem:[#allocation2 + $0x2d0] sm:$0xff]  ;;  %v394_v35 = vld [vmem:[#allocation2 + $0x2c8] sm:$0xff]  ;;  %v393_v36 = vld [vmem:[#allocation2 + $0x2c0] sm:$0xff] }
  0x2c   :  { %707 = vmatprep.subr.mxu1 %v112_v58  ;;  %670 = vmatpush3.msra.mxu0 %v64_v59  ;;  %v392_v37 = vld [vmem:[#allocation2 + $0x2b8] sm:$0xff]  ;;  %v391_v38 = vld [vmem:[#allocation2 + $0x2b0] sm:$0xff]  ;;  %v390_v39 = vld [vmem:[#allocation2 + $0x2a8] sm:$0xff] }
  0x2d   :  { %708 = vmatpush3.msra.mxu1 %v96_v60  ;;  %671 = vmatprep.subr.mxu0 %v79_v61  ;;  %v389_v40 = vld [vmem:[#allocation2 + $0x2a0] sm:$0xff]  ;;  %v388_v41 = vld [vmem:[#allocation2 + $0x298] sm:$0xff]  ;;  %v387_v42 = vld [vmem:[#allocation2 + $0x290] sm:$0xff] }
  0x2e   :  { %709 = vmatprep.subr.mxu1 %v111_v62  ;;  %672 = vmatpush3.msra.mxu0 %v63_v1  ;;  %v386_v43 = vld [vmem:[#allocation2 + $0x288] sm:$0xff]  ;;  %v385_v44 = vld [vmem:[#allocation2 + $0x280] sm:$0xff] }
  0x2f   :  { %627 = vmatprep.mubr.msk.f32.mxu0 %vm905_vm2, %v42_v63  ;;  %710 = vmatpush3.msra.mxu1 %v95_v4  ;;  %v487_v45 = vld [vmem:[%s959_s2 + $0x8] sm:$0x3]  ;;  %v486_v46 = vld [vmem:[%s959_s2] sm:$0xff] }
  0x30   :  { %634 = vmatprep.mubr.msk.f32.mxu1 %vm53_vm3, %v49_v3  ;;  %629 = vmatmul.mubr.msk.f32.vlgmr.msra.gmra.mxu0 %vm910_vm4, %v35_v5  ;;  %v485_v47 = vld [vmem:[%s960_s3] sm:$0x3] }
  0x31   :  { %283 = vmatmul.mubr.f32.vlgmr.msra.gmra.mxu1 %v31_v56  ;;  %755 = vmatprep.subr.mxu0 %v142_v8 }
  0x32   :  { %631 = vmatprep.mubr.msk.f32.mxu0 %vm905_vm2, %v43_v7  ;;  %756 = vmatpush3.msra.mxu0 %v142_v8 }
  0x33   :  { %635 = vmatprep.mubr.msk.f32.mxu1 %vm53_vm3, %v50_v9  ;;  %757 = vmatprep.subr.mxu0 %v141_v10 }
  0x34   :  { %758 = vmatpush3.msra.mxu0 %v141_v10  ;;  %790 = vmatprep.subr.mxu1 %v865_v29 }
  0x35   :  { %288 = vmatmul.mubr.f32.gmra.mxu1 %v902_v0  ;;  %759 = vmatprep.subr.mxu0 %v140_v12 }
  0x36   :  { %633 = vmatmul.mubr.msk.f32.gmra.mxu0 %vm910_vm4, %v36_v11  ;;  %791 = vmatpush3.msra.mxu1 %v400_v28  ;;  %v567_v28 = vlaneseq }
  0x37   :  { %760 = vmatpush3.msra.mxu0 %v140_v12  ;;  %787 = vmatprep.mubr.msk.f32.mxu0 %vm60_vm5, %v56_v13 }
  0x38   :  { %761 = vmatprep.subr.mxu0 %v139_v14  ;;  %792 = vmatprep.subr.mxu1 %v865_v29 }
  0x39   :  { %762 = vmatpush3.msra.mxu0 %v139_v14  ;;  %793 = vmatpush3.msra.mxu1 %v399_v30  ;;  %v479_v30 = vld [vmem:[%s959_s2 + $0xb] sm:$0x1] }
  0x3a   :  { %763 = vmatprep.subr.mxu0 %v138_v15  ;;  %794 = vmatprep.subr.mxu1 %v865_v29 }
  0x3b   :  { %764 = vmatpush3.msra.mxu0 %v138_v15  ;;  %795 = vmatpush3.msra.mxu1 %v398_v31 }
  0x3c   :  { %765 = vmatprep.subr.mxu0 %v137_v16  ;;  %796 = vmatprep.subr.mxu1 %v865_v29 }
  0x3d   :  { %766 = vmatpush3.msra.mxu0 %v137_v16  ;;  %797 = vmatpush3.msra.mxu1 %v397_v32 }
  0x3e   :  { %767 = vmatprep.subr.mxu0 %v136_v17  ;;  %798 = vmatprep.subr.mxu1 %v865_v29 }
  0x3f   :  { %768 = vmatpush3.msra.mxu0 %v136_v17  ;;  %799 = vmatpush3.msra.mxu1 %v396_v33  ;;  %v568_v33 = vshrl.u32 %v567_v28, 7 }
  0x40   :  { %769 = vmatprep.subr.mxu0 %v135_v18  ;;  %800 = vmatprep.subr.mxu1 %v865_v29 }
  0x41   :  { %770 = vmatpush3.msra.mxu0 %v135_v18  ;;  %801 = vmatpush3.msra.mxu1 %v395_v34  ;;  %v867_v34 = vmov 1966171168  }
  0x42   :  { %771 = vmatprep.subr.mxu0 %v134_v19  ;;  %802 = vmatprep.subr.mxu1 %v865_v29 }
  0x43   :  { %772 = vmatpush3.msra.mxu0 %v134_v19  ;;  %803 = vmatpush3.msra.mxu1 %v394_v35  ;;  %v586_v35 = vunpack.c.l.s4 %v867_v34 }
  0x44   :  { %773 = vmatprep.subr.mxu0 %v133_v20  ;;  %804 = vmatprep.subr.mxu1 %v865_v29 }
  0x45   :  { %774 = vmatpush3.msra.mxu0 %v133_v20  ;;  %805 = vmatpush3.msra.mxu1 %v393_v36  ;;  %v480_v36 = vld [vmem:[%s959_s2 + $0xc] sm:$0x1] }
  0x46   :  { %775 = vmatprep.subr.mxu0 %v132_v21  ;;  %806 = vmatprep.subr.mxu1 %v865_v29 }
  0x47   :  { %776 = vmatpush3.msra.mxu0 %v132_v21  ;;  %807 = vmatpush3.msra.mxu1 %v392_v37 }
  0x48   :  { %777 = vmatprep.subr.mxu0 %v131_v22  ;;  %808 = vmatprep.subr.mxu1 %v865_v29 }
  0x49   :  { %778 = vmatpush3.msra.mxu0 %v131_v22  ;;  %809 = vmatpush3.msra.mxu1 %v391_v38  ;;  %v569_v38 = vsub.s32 0, %v568_v33 }
  0x4a   :  { %779 = vmatprep.subr.mxu0 %v130_v23  ;;  %810 = vmatprep.subr.mxu1 %v865_v29 }
  0x4b   :  { %780 = vmatpush3.msra.mxu0 %v130_v23  ;;  %811 = vmatpush3.msra.mxu1 %v390_v39 }
  0x4c   :  { %781 = vmatprep.subr.mxu0 %v129_v24  ;;  %812 = vmatprep.subr.mxu1 %v865_v29 }
  0x4d   :  { %782 = vmatpush3.msra.mxu0 %v129_v24  ;;  %813 = vmatpush3.msra.mxu1 %v389_v40  ;;  %v587_v40 = vunpack.c.0.s8 %v586_v35 }
  0x4e   :  { %783 = vmatprep.subr.mxu0 %v128_v25  ;;  %814 = vmatprep.subr.mxu1 %v865_v29 }
  0x4f   :  { %784 = vmatpush3.msra.mxu0 %v128_v25  ;;  %815 = vmatpush3.msra.mxu1 %v388_v41 }
  0x50   :  { %785 = vmatprep.subr.mxu0 %v127_v26  ;;  %816 = vmatprep.subr.mxu1 %v865_v29 }
  0x51   :  { %786 = vmatpush3.msra.mxu0 %v127_v26  ;;  %822 = vmatprep.mubr.msk.f32.mxu1 %vm866_vm6, %v865_v29 }
  0x52   :  { %788 = vmatmul.mubr.msk.f32.vlgmr.msra.gmra.mxu0 %vm60_vm5, %v57_v27  ;;  %825 = vmatprep.subr.mxu0 %v865_v29 }
  0x53   :  { %817 = vmatpush3.msra.mxu1 %v387_v42  ;;  %829 = vmatprep.mubr.msk.f32.mxu0 %vm866_vm6, %v865_v29  ;;  %v640_v42 = vld [vmem:[%s959_s2 + $0xa] ss:$0 sm:$0xff] }
  0x54   :  { %818 = vmatprep.subr.mxu1 %v865_v29  ;;  %826 = vmatpush3.msk.msra.mxu0 %vm39_vm1, %v487_v45 }
  0x55   :  { %819 = vmatpush3.msra.mxu1 %v386_v43  ;;  %827 = vmatprep.subr.mxu0 %v865_v29 }
  0x56   :  { %820 = vmatprep.subr.mxu1 %v865_v29  ;;  %828 = vmatpush3.msra.mxu0 %v486_v46 }
  0x57   :  { %821 = vmatpush3.msra.mxu1 %v385_v44  ;;  %830 = vmatmul.mubr.msk.f32.vlgmr.msra.gmra.mxu0 %vm488_vm7, %v485_v47  ;;  %v590_v44 = vsub.s32 %v587_v40, %v568_v33 }
  0xf0   :  { %v673_v48 = vpop.f32.mrf.mxu0 }
  0xf1   :  { %v711_v49 = vpop.f32.mrf.mxu1 }
  0xf2   :  { %v674_v50 = vpop.f32.mrf.mxu0 }
  0xf3   :  { %v712_v51 = vpop.f32.mrf.mxu1  ;;  %v675_v58 = vadd.f32 %v674_v50, %v673_v48 }
  0xf4   :  { %v713_v59 = vadd.f32 %v712_v51, %v711_v49 }
  0xf5   :  { %v714_v53 = vpop.f32.mrf.mxu1 }
  0xf6   :  { %v676_v52 = vpop.f32.mrf.mxu0  ;;  %v285_v63 = vadd.f32 %v713_v59, %v675_v58 }
  0xf7   :  { %v715_v55 = vpop.f32.mrf.mxu1 }
  0xf8   :  { %v677_v54 = vpop.f32.mrf.mxu0  ;;  %v716_v57 = vadd.f32 %v715_v55, %v714_v53 }
  0xf9   :  { %v678_v56 = vadd.f32 %v677_v54, %v676_v52 }
  0xfb   :  { %v290_v60 = vadd.f32 %v716_v57, %v678_v56 }
 0x112   :  { %v789_v61 = vpop.f32.mrf.mxu0 }
 0x113   :  { %v365_v62 = vadd.f32 %v789_v61, %v290_v60 }
 0x114   :  { %v359_v0 = vpop.f32.mrf.mxu0 }
 0x115   :  { %v360_v1 = vadd.f32 %v359_v0, %v285_v63  ;;  %v376_v2 = vmul.f32 %v365_v62, %v365_v62 }
 0x117   :  { %v368_v3 = vadd.f32 %v365_v62, %v360_v1  ;;  %v375_v4 = vmul.f32 %v360_v1, %v360_v1  ;;  %v561_v19 = vpop.f32.mrf.mxu0 }
 0x119   :  { %v369_v5 = vrot.slane %v368_v3, 4  ;;  %v377_v6 = vadd.f32 %v376_v2, %v375_v4  ;;  %v831_v20 = vpop.f32.mrf.mxu0 }
 0x11b   :  { %v370_v7 = vadd.f32 %v369_v5, %v368_v3  ;;  %v378_v8 = vrot.slane %v377_v6, 4 }
 0x11d   :  { %v371_v9 = vrot.slane %v370_v7, 2  ;;  %v379_v10 = vadd.f32 %v378_v8, %v377_v6 }
 0x11f   :  { %v372_v11 = vadd.f32 %v371_v9, %v370_v7  ;;  %v380_v12 = vrot.slane %v379_v10, 2 }
 0x121   :  { %v373_v13 = vrot.slane %v372_v11, 1  ;;  %v381_v14 = vadd.f32 %v380_v12, %v379_v10 }
 0x123   :  { %v382_v15 = vrot.slane %v381_v14, 1  ;;  %v374_v16 = vadd.f32 %v373_v13, %v372_v11 }
 0x125   :  { %v383_v17 = vadd.f32 %v382_v15, %v381_v14 }
 0x127   :  { %v384_v18 = vsel %vm46_vm0, %v374_v16, %v383_v17 }
 0x128   :  { %823 = vmatmul.mubr.f32.vlgmr.msra.gmra.mxu1 %v384_v18 }
 0x1e8   :  { %v467_v21 = vpop.f32.mrf.mxu1 }
 0x1e9   :  { %v471_v22 = vmul.f32 0.0078125, %v467_v21 }
 0x1ea   :  { %v824_v23 = vpop.f32.mrf.mxu1 }
 0x1eb   :  { %v472_v24 = vmul.f32 %v471_v22, %v471_v22 }
 0x1ed   :  { %v474_v25 = vrot.slane %v472_v24, 7 }
 0x1ef   :  { %v476_v26 = vsub.f32 %v471_v22, %v474_v25 }
 0x1f1   :  { %v477_v27 = vadd.f32 1e-05, %v476_v26 }
 0x1f3   :  { %838 = vrsqrt.f32 %v477_v27 }
 0x200   :  { %v839_v29 = vpop.eup %838 }
 0x201   :  { %v482_v31 = vrot.slane %v839_v29, 1 }
 0x203   :  { %v484_v32 = vmul.f32 %v482_v31, %v479_v30 }
 0x205   :  { %v565_v37 = vmul.f32 %v484_v32, %v471_v22  ;;  %v581_v46 = vrot.slane %v484_v32, %v569_v38 }
 0x207   :  { %v566_v39 = vsub.f32 %v480_v36, %v565_v37  ;;  %v582_v50 = vmul.f32 %v581_v46, %v360_v1  ;;  %v583_v53 = vmul.f32 %v581_v46, %v365_v62 }
 0x209   :  { %v570_v41 = vrot.slane %v566_v39, %v569_v38 }
 0x20b   :  { %v571_v43 = vadd.f32 %v570_v41, %v561_v19 }
 0x20d   :  { %v577_v45 = vadd.f32 %v640_v42, %v571_v43 }
 0x20f   :  { %v591_v47 = vrot.slane %v577_v45, %v590_v44 }
 0x211   :  { %v592_v48 = vcombine.high %v591_v47, %v591_v47  ;;  %v599_v49 = vrot.slane %v591_v47, %v590_v44 }
 0x213   :  { %v606_v51 = vrot.slane %v592_v48, %v590_v44  ;;  %v610_v52 = vrot.slane %v599_v49, %v569_v38 }
 0x215   :  { %v614_v54 = vrot.slane %v606_v51, %v569_v38  ;;  %v617_v55 = vadd.f32 %v610_v52, %v582_v50 }
 0x217   :  { %v618_v56 = vadd.f32 %v614_v54, %v583_v53  ;;  %619 = vst [vmem:[%s961_s4] sm:$0xff] %v617_v55 }
 0x219   :  { %620 = vst [vmem:[%s961_s4 + $0x8] sm:$0xff] %v618_v56 }
 0x21a   :  { %625 = vsyncpa [#allocation3], 1 }

</bundles_post_ra>
